<compile_context>
chip_gen: v7x
topology: tpu7x:2x2x1
jax: 0.10.0
libtpu: 0.0.40
codegen_flags: <defaults>
</compile_context>

<pallas_src>
import jax
import jax.numpy as jnp
from jax.experimental import pallas as pl
from jax.experimental.pallas import tpu as pltpu

_LANES = 128
_SUB = 8
_NCORES = 2                                 # v7x: 2 TCs; harmless elsewhere
_BYTES_PER_INPUT_BLOCK = 4 * 1024 * 1024    # 4 MiB/input/block -> 16 MiB dbl-buffered


def _dice_partial_kernel(p_ref, t_ref, o_ref):
    """Accumulate per-core partial sums.

    p_ref, t_ref : (block_rows, 128) tiles of the flattened inputs (native dtype)
    o_ref        : (1, 2, 8, 128) f32 block, resident across the reduction axis
                   o_ref[0, 0] accumulates sum(p * t) per (sublane, lane)
                   o_ref[0, 1] accumulates sum(p + t) per (sublane, lane)
    """
    step = pl.program_id(1)

    @pl.when(step == 0)
    def _init():
        o_ref[...] = jnp.zeros_like(o_ref)

    p = p_ref[...].astype(jnp.float32)      # in-kernel cast: free under the DMA
    t = t_ref[...].astype(jnp.float32)
    k = p.shape[0] // _SUB
    pt = (p * t).reshape(k, _SUB, _LANES)   # leading-dim split: layout no-op
    ps = (p + t).reshape(k, _SUB, _LANES)
    o_ref[0, 0] += jnp.sum(pt, axis=0)      # vreg-shaped adds, no per-step XLU
    o_ref[0, 1] += jnp.sum(ps, axis=0)


def dice_loss(predictions, targets, smooth: float = 1.0):
    """Pallas implementation of DiceLoss.forward (returns a scalar f32)."""
    p_flat = predictions.reshape(-1)
    t_flat = targets.reshape(-1)
    n = p_flat.shape[0]

    # ---- Layout: (rows, 128); copy-free when n is a multiple of 128 ---------
    p2, t2 = p_flat, t_flat
    if n % _LANES != 0:                     # rare ragged case: single small pad pass
        pad = _LANES - n % _LANES
        p2 = jnp.pad(p2, (0, pad))
        t2 = jnp.pad(t2, (0, pad))
    rows = p2.shape[0] // _LANES
    p2 = p2.reshape(rows, _LANES)
    t2 = t2.reshape(rows, _LANES)
    if rows < _SUB:                         # tiny input: pad up to one (8,128) tile
        p2 = jnp.pad(p2, ((0, _SUB - rows), (0, 0)))
        t2 = jnp.pad(t2, ((0, _SUB - rows), (0, 0)))
        rows = _SUB
    rows8 = (rows // _SUB) * _SUB           # sublane-aligned rows the kernel may touch

    # ---- Grid: (cores, reduction steps), full blocks only -------------------
    itemsize = max(jnp.dtype(p2.dtype).itemsize, jnp.dtype(t2.dtype).itemsize)
    max_block_rows = max(
        _SUB, (_BYTES_PER_INPUT_BLOCK // (_LANES * itemsize)) // _SUB * _SUB)
    ncores = _NCORES if rows8 >= _NCORES * _SUB else 1
    n_inner = max(1, pl.cdiv(rows8, ncores * max_block_rows))
    n_blocks = ncores * n_inner
    # By construction rows8 >= 8 * n_blocks, so block_rows >= 8 and covered <= rows8.
    block_rows = (rows8 // n_blocks) // _SUB * _SUB
    covered = n_blocks * block_rows         # rows reduced inside the kernel

    partial = pl.pallas_call(
        _dice_partial_kernel,
        out_shape=jax.ShapeDtypeStruct((ncores, 2, _SUB, _LANES), jnp.float32),
        grid=(ncores, n_inner),
        in_specs=[
            pl.BlockSpec((block_rows, _LANES), lambda c, i: (c * n_inner + i, 0)),
            pl.BlockSpec((block_rows, _LANES), lambda c, i: (c * n_inner + i, 0)),
        ],
        out_specs=pl.BlockSpec((1, 2, _SUB, _LANES), lambda c, i: (c, 0, 0, 0)),
        compiler_params=pltpu.CompilerParams(
            dimension_semantics=("parallel", "arbitrary"),
            vmem_limit_bytes=32 * 1024 * 1024,
        ),
    )(p2, t2)

    # ---- Tiny JAX epilogue: collapse partials, fold tail, dice formula ------
    intersection = jnp.sum(partial[:, 0])
    total = jnp.sum(partial[:, 1])
    tail_start = covered * _LANES
    if tail_start < n:                      # leftover rows / sub-128 tail (fused, no copy)
        p_tail = p_flat[tail_start:].astype(jnp.float32)
        t_tail = t_flat[tail_start:].astype(jnp.float32)
        intersection = intersection + jnp.sum(p_tail * t_tail)
        total = total + jnp.sum(p_tail) + jnp.sum(t_tail)

    dice = (2.0 * intersection + smooth) / (total + smooth)
    return 1.0 - dice


def dice_loss_ref(predictions, targets, smooth: float = 1.0):
    p = predictions.reshape(-1).astype(jnp.float32)
    t = targets.reshape(-1).astype(jnp.float32)
    intersection = jnp.sum(p * t)
    dice = (2.0 * intersection + smooth) / (jnp.sum(p) + jnp.sum(t) + smooth)
    return 1.0 - dice


if __name__ == "__main__":
    key = jax.random.PRNGKey(0)
    kp, kt = jax.random.split(key)
    # Segmentation-style inputs: predictions in [0,1], binary targets.
    predictions = jax.nn.sigmoid(
        jax.random.normal(kp, (2, 4, 16, 16), jnp.float32))
    targets = (jax.random.uniform(kt, (2, 4, 16, 16), jnp.float32)
               > 0.5).astype(jnp.float32)

    loss = dice_loss(predictions, targets, smooth=1.0)
    jax.block_until_ready(loss)

    ref = dice_loss_ref(predictions, targets, smooth=1.0)
    assert loss.shape == (), loss.shape
    assert bool(jnp.isfinite(loss)), loss
    assert bool(jnp.abs(loss - ref) < 1e-5), (loss, ref)
    print("KERNEL_OK")
</pallas_src>

<mosaic_0001>
module attributes {stable_mosaic.version = 11 : i64} {
  func.func @_dice_partial_kernel(%arg0: i32, %arg1: i32, %arg2: memref<8x128xf32, #tpu.memory_space<vmem>>, %arg3: memref<8x128xf32, #tpu.memory_space<vmem>>, %arg4: memref<1x2x8x128xf32, #tpu.memory_space<vmem>>) attributes {dimension_semantics = [#tpu.dimension_semantics<parallel>, #tpu.dimension_semantics<arbitrary>], iteration_bounds = array<i64: 2, 1>, scalar_prefetch = 0 : i64, scratch_operands = 0 : i64, tpu.core_type = #tpu.core_type<tc>, window_params = [{transform_indices = @transform_0, window_bounds = array<i64: 8, 128>}, {transform_indices = @transform_1, window_bounds = array<i64: 8, 128>}, {transform_indices = @transform_2, window_bounds = array<i64: 1, 2, 8, 128>}]} {
    %c0_i32 = arith.constant 0 : i32
    %0 = arith.cmpi eq, %arg1, %c0_i32 : i32
    %1 = arith.extui %0 : i1 to i32
    %c0_i32_0 = arith.constant 0 : i32
    %2 = arith.cmpi ne, %1, %c0_i32_0 : i32
    scf.if %2 {
      %cst_20 = arith.constant 0.000000e+00 : f32
      %23 = vector.broadcast %cst_20 : f32 to vector<1x2x8x128xf32>
      %c0_21 = arith.constant 0 : index
      %c0_22 = arith.constant 0 : index
      %c0_23 = arith.constant 0 : index
      %c0_24 = arith.constant 0 : index
      %24 = vector.load %arg4[%c0_21, %c0_22, %c0_23, %c0_24] : memref<1x2x8x128xf32, #tpu.memory_space<vmem>>, vector<1x2x8x128xf32>
      tpu.vector_store %arg4[%c0_21, %c0_22, %c0_23, %c0_24], %23 {strides = array<i32>} : memref<1x2x8x128xf32, #tpu.memory_space<vmem>>, vector<1x2x8x128xf32>,
    } else {
    }
    %c0 = arith.constant 0 : index
    %c0_1 = arith.constant 0 : index
    %3 = vector.load %arg2[%c0, %c0_1] : memref<8x128xf32, #tpu.memory_space<vmem>>, vector<8x128xf32>
    %c0_2 = arith.constant 0 : index
    %c0_3 = arith.constant 0 : index
    %4 = vector.load %arg3[%c0_2, %c0_3] : memref<8x128xf32, #tpu.memory_space<vmem>>, vector<8x128xf32>
    %5 = arith.mulf %3, %4 : vector<8x128xf32>
    %6 = vector.shape_cast %5 : vector<8x128xf32> to vector<1x8x128xf32>
    %7 = arith.addf %3, %4 : vector<8x128xf32>
    %8 = vector.shape_cast %7 : vector<8x128xf32> to vector<1x8x128xf32>
    %c0_4 = arith.constant 0 : index
    %c0_5 = arith.constant 0 : index
    %c0_6 = arith.constant 0 : index
    %c0_7 = arith.constant 0 : index
    %9 = vector.load %arg4[%c0_4, %c0_5, %c0_6, %c0_7] : memref<1x2x8x128xf32, #tpu.memory_space<vmem>>, vector<1x1x8x128xf32>
    %10 = vector.shape_cast %9 : vector<1x1x8x128xf32> to vector<8x128xf32>
    %cst = arith.constant dense<0.000000e+00> : vector<8x128xf32>
    %11 = vector.multi_reduction <add>, %6, %cst [0] : vector<1x8x128xf32> to vector<8x128xf32>
    %12 = arith.addf %10, %11 : vector<8x128xf32>
    %c0_8 = arith.constant 0 : index
    %c0_9 = arith.constant 0 : index
    %c0_10 = arith.constant 0 : index
    %c0_11 = arith.constant 0 : index
    %13 = vector.load %arg4[%c0_8, %c0_9, %c0_10, %c0_11] : memref<1x2x8x128xf32, #tpu.memory_space<vmem>>, vector<1x1x8x128xf32>
    %14 = vector.shape_cast %13 : vector<1x1x8x128xf32> to vector<8x128xf32>
    %15 = vector.shape_cast %12 : vector<8x128xf32> to vector<1x1x8x128xf32>
    tpu.vector_store %arg4[%c0_8, %c0_9, %c0_10, %c0_11], %15 {strides = array<i32>} : memref<1x2x8x128xf32, #tpu.memory_space<vmem>>, vector<1x1x8x128xf32>,
    %c0_12 = arith.constant 0 : index
    %c1 = arith.constant 1 : index
    %c0_13 = arith.constant 0 : index
    %c0_14 = arith.constant 0 : index
    %16 = vector.load %arg4[%c0_12, %c1, %c0_13, %c0_14] : memref<1x2x8x128xf32, #tpu.memory_space<vmem>>, vector<1x1x8x128xf32>
    %17 = vector.shape_cast %16 : vector<1x1x8x128xf32> to vector<8x128xf32>
    %cst_15 = arith.constant dense<0.000000e+00> : vector<8x128xf32>
    %18 = vector.multi_reduction <add>, %8, %cst_15 [0] : vector<1x8x128xf32> to vector<8x128xf32>
    %19 = arith.addf %17, %18 : vector<8x128xf32>
    %c0_16 = arith.constant 0 : index
    %c1_17 = arith.constant 1 : index
    %c0_18 = arith.constant 0 : index
    %c0_19 = arith.constant 0 : index
    %20 = vector.load %arg4[%c0_16, %c1_17, %c0_18, %c0_19] : memref<1x2x8x128xf32, #tpu.memory_space<vmem>>, vector<1x1x8x128xf32>
    %21 = vector.shape_cast %20 : vector<1x1x8x128xf32> to vector<8x128xf32>
    %22 = vector.shape_cast %19 : vector<8x128xf32> to vector<1x1x8x128xf32>
    tpu.vector_store %arg4[%c0_16, %c1_17, %c0_18, %c0_19], %22 {strides = array<i32>} : memref<1x2x8x128xf32, #tpu.memory_space<vmem>>, vector<1x1x8x128xf32>,
    return
  }
  func.func @transform_0(%arg0: i32, %arg1: i32) -> (i32, i32) {
    %c1_i32 = arith.constant 1 : i32
    %0 = arith.muli %arg0, %c1_i32 : i32
    %1 = arith.addi %0, %arg1 : i32
    %c0_i32 = arith.constant 0 : i32
    %c0_i32_0 = arith.constant 0 : i32
    return %1, %c0_i32 : i32, i32
  }
  func.func @transform_1(%arg0: i32, %arg1: i32) -> (i32, i32) {
    %c1_i32 = arith.constant 1 : i32
    %0 = arith.muli %arg0, %c1_i32 : i32
    %1 = arith.addi %0, %arg1 : i32
    %c0_i32 = arith.constant 0 : i32
    %c0_i32_0 = arith.constant 0 : i32
    return %1, %c0_i32 : i32, i32
  }
  func.func @transform_2(%arg0: i32, %arg1: i32) -> (i32, i32, i32, i32) {
    %c0_i32 = arith.constant 0 : i32
    %c0_i32_0 = arith.constant 0 : i32
    %c0_i32_1 = arith.constant 0 : i32
    %c0_i32_2 = arith.constant 0 : i32
    return %arg0, %c0_i32, %c0_i32_0, %c0_i32_1 : i32, i32, i32, i32
  }
}

</mosaic_0001>

<bundles_post_ra>
// kernel: tpu_custom_call.1
= control target key start
LH: loop header
LB: loop body
LE: loop exit
PB: predicated region body
PF: predicated region fallthrough
CT: control target
= control target key end

     0   :  { %7 = vsyncpa [#allocation3], 0  ;;  %s836_s0 = inlined_call_operand.hbm [shape: f32[16,128], index: 0, kind: input, shape index: {}]   ;;  %s837_s1 = inlined_call_operand.hbm [shape: f32[16,128], index: 1, kind: input, shape index: {}]   ;;  %s838_s2 = inlined_call_operand.hbm [shape: f32[2,2,8,128], index: 2, kind: output, shape index: {}]  }
   0x1   :  { %9 = vsyncpa [#allocation3 + $0x1], 0 }
   0x2   :  { %10 = vsyncpa [#allocation6], 0 }
   0x3   :  { %12 = vsyncpa [#allocation6 + $0x1], 0 }
   0x4   :  { %13 = vsyncpa [#allocation4], 0 }
   0x5   :  { %15 = vsyncpa [#allocation4 + $0x1], 0  ;;  %s613_s9 = smov 0   ;;  %s615_s10 = smov 0  }
   0x6   :  { %s617_s11 = smov 0   ;;  %s619_s12 = smov 0  }
   0x7   :  { %s621_s13 = smov 0   ;;  %s623_s14 = smov 0  }
   0x8 LB: > { %s355_s15 = sadd.s32 4294967295, %s591_s14   ;;  %s356_s16 = sadd.s32 4294967294, %s591_s14   ;;  %s591_s14 = sphi %s623_s14, %s21_s14   ;;  %s587_s13 = sphi %s621_s13, %s858_s13   ;;  %s583_s12 = sphi %s619_s12, %s857_s12   ;;  %s579_s11 = sphi %s617_s11, %s856_s11   ;;  %s575_s10 = sphi %s615_s10, %s855_s10   ;;  %s571_s9 = sphi %s613_s9, %s854_s9  }
   0x9   : > { %s33_s17 = sadd.s32 1, %s587_s13  ;;  %s42_s18 = sadd.s32 1, %s579_s11 }
   0xa   : > { %p35_p0 = scmp.ge.s32.totalorder %s33_s17, 2  ;;  %p49_p1 = scmp.ne.s32.totalorder %s579_s11, %s575_s10 }
   0xb   : > { %p50_p2 = scmp.eq.s32.totalorder %s591_s14, 0  ;;  %p55_p3 = scmp.ne.s32.totalorder %s575_s10, %s571_s9 }
   0xc   : > { %s860_s17 = smov (%p35_p0, %s33_s17), 0  ;;  %p56_p5 = scmp.eq.s32.totalorder %s355_s15, 0 }
   0xd   : > { %p654_p4 = por %p50_p2, %p49_p1  ;;  %s39_s20 = ssub.s32 %s587_s13, %s860_s17 }
   0xe   : > { %p107_p6 = scmp.eq.s32.totalorder %s355_s15, 1  ;;  %p40_p7 = scmp.eq.s32.totalorder %s39_s20, 0 }
   0xf   : > { %p660_p8 = por %p56_p5, %p55_p3  ;;  %p113_p10 = scmp.eq.s32.totalorder %s356_s16, 1 }
  0x10   : > { %p664_p9 = por %p107_p6, %p49_p1  ;;  %p392_p13 = scmp.lt.s32.totalorder %s591_s14, 2 }
  0x11   : > { %s842_s21 = scalar_select %p660_p8, 1, 0 }
  0x12   : > { %s843_s22 = scalar_select %p664_p9, 1, 0 }
  0x13   : > { %s669_s23 = scalar_select %p40_p7, %s579_s11, %s42_s18  }
  0x14   : > { %p671_p11 = por %p113_p10, %p55_p3  ;;  %s678_s25 = sand.u32 1, %s579_s11  }
  0x15   : > { %s359_s26 = sshll.u32 %s678_s25, 3  ;;  %s360_s27 = sshll.u32 %s587_s13, 7 }
  0x16   : > { %s844_s24 = scalar_select %p671_p11, 1, 0 }
  0x17   : > { %s687_s30 = scalar_lea.hbm %s836_s0, %s360_s27  ;;  %s137_s3 = scalar_lea.vmem [#allocation2], %s359_s26 }
  0x18   : > { %s145_s4 = sshll.u32 %s137_s3, 4  ;;  %p695_p0 = pnand %p392_p13, %p654_p4  ;;  %s691_s4 = int_to_ptr.vmem [resolvable:$true] %s145_s4 }
  0x19   : > { %s134_s6 = scalar_lea.sflag [#allocation3], %s678_s25  ;;  %s445_s7 = scalar_lea.hbm %s687_s30, 128 }
  0x1a   : > { %p446_p3 = scmp.ne.s32.totalorder %s687_s30, %s445_s7  ;;  %p447_p5 = pneg %p695_p0 }
  0x1b   : > { %s450_s16 = scalar_lea.hbm %s836_s0, 256  ;;  %p451_p4 = scmp.lt.u32.totalorder %s687_s30, %s836_s0 }
  0x1c   : > { %p448_p6 = pnand %p447_p5, %p446_p3  ;;  %p452_p10 = scmp.lt.u32.totalorder %s450_s16, %s445_s7 }
  0x1d   : > { %p454_p12 = scmp.lt.u32.totalorder %s445_s7, %s687_s30 }
  0x1e   : > { %p449_p7 = pneg %p448_p6  ;;  %p453_p13 = por %p452_p10, %p451_p4 }
  0x20   : > { %p455_p1 = por %p454_p12, %p453_p13 }
  0x22   : > { %p456_p2 = pnand %p455_p1, %p449_p7 }
  0x24   : > { %459 = shalt.err (!%p456_p2)
}
  0x25   : > { %s460_s20 = scalar_lea.vmem %s691_s4, 128  ;;  %s593_s28 = smov [#allocation2]  }
  0x26   : > { %p461_p3 = scmp.ne.s32.totalorder %s691_s4, %s460_s20  ;;  %s465_s29 = sshll.u32 %s593_s28, 4  ;;  %s466_s29 = int_to_ptr.vmem [resolvable:$false] %s465_s29 }
  0x27   : > { %s467_s3 = scalar_lea.vmem %s466_s29, 256  ;;  %p468_p9 = scmp.lt.s32.totalorder %s691_s4, %s466_s29 }
  0x28   : > { %p463_p6 = pnand %p461_p3, %p447_p5  ;;  %p469_p4 = scmp.lt.s32.totalorder %s467_s3, %s460_s20 }
  0x2a   : > { %p464_p11 = pneg %p463_p6  ;;  %p470_p10 = por %p469_p4, %p468_p9 }
  0x2c   : > { %p471_p12 = pnand %p470_p10, %p464_p11 }
  0x2e   : > { %474 = shalt.err (!%p471_p12)
}
  0x2f   : > { %384 = dma.hbm_to_vmem [thread:$0]  (!%p695_p0), %s687_s30, 128, %s691_s4, %s134_s6  }
  0x30   : > { %p846_p1 = scmp.lt.s32.totalorder %s591_s14, 3  ;;  %p847_p2 = scmp.ge.s32.totalorder %s591_s14, 1 }
  0x31   : > { %s740_s16 = scalar_lea.hbm %s837_s1, %s360_s27  ;;  %s156_s18 = scalar_lea.vmem [#allocation5], %s359_s26 }
  0x32   : > { %p731_p7 = pnand %p847_p2, %p846_p1  ;;  %s164_s19 = sshll.u32 %s156_s18, 4  ;;  %s165_s19 = int_to_ptr.vmem [resolvable:$true] %s164_s19 }
  0x33   : > { %s153_s30 = scalar_lea.sflag [#allocation6], %s678_s25  ;;  %s475_s4 = scalar_lea.hbm %s740_s16, 128 }
  0x34   : > { %s848_s7 = scalar_select %p731_p7, 1, 0 }
  0x35   : > { %p476_p9 = scmp.ne.s32.totalorder %s740_s16, %s475_s4  ;;  %s480_s27 = scalar_lea.hbm %s837_s1, 256 }
  0x36   : > { %p481_p3 = scmp.lt.u32.totalorder %s740_s16, %s837_s1  ;;  %p482_p6 = scmp.lt.u32.totalorder %s480_s27, %s475_s4 }
  0x37   : > { %p478_p11 = pnand %p476_p9, %p447_p5  ;;  %p484_p10 = scmp.lt.u32.totalorder %s475_s4, %s740_s16 }
  0x38   : > { %p483_p4 = por %p482_p6, %p481_p3 }
  0x39   : > { %p479_p13 = pneg %p478_p11 }
  0x3a   : > { %p485_p12 = por %p484_p10, %p483_p4 }
  0x3c   : > { %p486_p1 = pnand %p485_p12, %p479_p13 }
  0x3e   : > { %489 = shalt.err (!%p486_p1)
}
  0x3f   : > { %s490_s25 = scalar_lea.vmem %s165_s19, 128  ;;  %s594_s26 = smov [#allocation5]  }
  0x40   : > { %p491_p2 = scmp.ne.s32.totalorder %s165_s19, %s490_s25  ;;  %s495_s3 = sshll.u32 %s594_s26, 4  ;;  %s496_s3 = int_to_ptr.vmem [resolvable:$false] %s495_s3 }
  0x41   : > { %s497_s8 = scalar_lea.vmem %s496_s3, 256  ;;  %p498_p8 = scmp.lt.s32.totalorder %s165_s19, %s496_s3 }
  0x42   : > { %p493_p9 = pnand %p491_p2, %p447_p5  ;;  %p499_p7 = scmp.lt.s32.totalorder %s497_s8, %s490_s25 }
  0x44   : > { %p494_p11 = pneg %p493_p9  ;;  %p500_p3 = por %p499_p7, %p498_p8 }
  0x46   : > { %p501_p6 = pnand %p500_p3, %p494_p11 }
  0x48   : > { %504 = shalt.err (!%p501_p6)
}
  0x49   : > { %387 = dma.hbm_to_vmem [thread:$0]  (!%p695_p0), %s740_s16, 128, %s165_s19, %s153_s30  }
  0x4a   : > { %p849_p13 = scmp.ne.s32.totalorder %s848_s7, 0 }
  0x4b   : > { %s767_s15 = sand.u32 (!%p849_p13), 1, %s575_s10   ;;  %p850_p5 = scmp.ne.s32.totalorder (!%p849_p13), %s842_s21, 0 }
  0x4c   : > { %173 = sbr.rel (%p849_p13) target bundleno = 113 (0x71), region = 28  ;;  %s364_s18 = sshll.u32 (!%p849_p13), %s767_s15, 3 }
  0x4d   : > { %s176_s4 = scalar_lea.sflag (!%p849_p13), [#allocation3], %s767_s15  ;;  %s179_s6 = scalar_lea.vmem (!%p849_p13), [#allocation2], %s364_s18 }
  0x53   : > { %558 = dma.done.wait (%p850_p5), %s176_s4, 128  }
  0x54   : > { %560 = vsyncadd (%p850_p5), %s176_s4, 4294967168  ;;  %s185_s5 = scalar_lea.sflag [#allocation6], %s767_s15  ;;  %s188_s16 = scalar_lea.vmem [#allocation5], %s364_s18 }
  0x55   : > { %562 = dma.done.wait (%p850_p5), %s185_s5, 128  }
  0x56   : > { %564 = vsyncadd (%p850_p5), %s185_s5, 4294967168  ;;  %s366_s7 = sshll.u32 %s767_s15, 4  ;;  %s374_s19 = sshll.u32 %s583_s12, 8  ;;  %v222_v0 = vld [vmem:[%s179_s6] sm:$0xff]  ;;  %v223_v1 = vld [vmem:[%s188_s16] sm:$0xff] }
  0x57   : > { %s213_s30 = scalar_lea.vmem [#allocation7], %s366_s7  ;;  %v224_v2 = vmul.f32 %v223_v1, %v222_v0  ;;  %v225_v3 = vadd.f32 %v223_v1, %v222_v0  ;;  %s785_s29 = scalar_lea.hbm %s838_s2, %s374_s19 }
  0x58   : > { %s249_s20 = sshll.u32 %s213_s30, 4  ;;  %s236_s21 = scalar_lea.sflag [#allocation4], %s767_s15  ;;  %s787_s20 = int_to_ptr.vmem [resolvable:$true] %s249_s20 }
  0x59   : > { %229 = vst [vmem:[%s213_s30] sm:$0xff] %v224_v2  ;;  %368 = vst [vmem:[%s213_s30 + $0x8] sm:$0xff] %v225_v3  ;;  %s505_s12 = scalar_lea.vmem %s787_s20, 256  ;;  %p851_p0 = scmp.ne.s32.totalorder %s843_s22, 0 }
  0x5a   : > { %p506_p8 = scmp.ne.s32.totalorder %s787_s20, %s505_s12  ;;  %s595_s25 = smov [#allocation7]  }
  0x5b   : > { %s509_s26 = sshll.u32 %s595_s25, 4  ;;  %s510_s26 = int_to_ptr.vmem [resolvable:$false] %s509_s26 }
  0x5c   : > { %p507_p7 = pnand %p506_p8, %p851_p0  ;;  %s511_s3 = scalar_lea.vmem %s510_s26, 512 }
  0x5d   : > { %p512_p10 = scmp.lt.s32.totalorder %s787_s20, %s510_s26  ;;  %p513_p12 = scmp.lt.s32.totalorder %s511_s3, %s505_s12 }
  0x5e   : > { %p508_p4 = pneg %p507_p7 }
  0x5f   : > { %p514_p1 = por %p513_p12, %p512_p10 }
  0x61   : > { %p515_p2 = pnand %p514_p1, %p508_p4 }
  0x63   : > { %518 = shalt.err (!%p515_p2)
}
  0x64   : > { %s519_s8 = scalar_lea.hbm %s785_s29, 256  ;;  %s523_s6 = scalar_lea.hbm %s838_s2, 512 }
  0x65   : > { %p520_p9 = scmp.ne.s32.totalorder %s785_s29, %s519_s8  ;;  %p524_p6 = scmp.lt.u32.totalorder %s785_s29, %s838_s2 }
  0x66   : > { %p525_p13 = scmp.lt.u32.totalorder %s523_s6, %s519_s8  ;;  %p527_p8 = scmp.lt.u32.totalorder %s519_s8, %s785_s29 }
  0x67   : > { %p521_p11 = pnand %p520_p9, %p851_p0 }
  0x68   : > { %p526_p5 = por %p525_p13, %p524_p6 }
  0x69   : > { %p522_p3 = pneg %p521_p11 }
  0x6a   : > { %p528_p7 = por %p527_p8, %p526_p5 }
  0x6c   : > { %p529_p4 = pnand %p528_p7, %p522_p3 }
  0x6e   : > { %532 = shalt.err (!%p529_p4)
}
  0x6f   : > { %s596_s7 = smov 128   ;;  %s597_s19 = smov 8  }
  0x70   : > { %379 = dma.vmem_to_hbm [thread:$0]  (%p851_p0), %s787_s20, 256, %s785_s29, %s236_s21, %s596_s7, %s596_s7, %s597_s19  }
  0x71 PF: > { %s264_s30 = sand.u32 1, %s571_s9   ;;  %p852_p10 = scmp.ne.s32.totalorder %s844_s24, 0 }
  0x72   : > { %p853_p12 = scmp.ge.s32.totalorder %s591_s14, 2  ;;  %s265_s27 = scalar_lea.sflag [#allocation4], %s264_s30 }
  0x74   : > { %p389_p1 = pnand %p853_p12, %p852_p10 }
  0x76   : > { %566 = dma.done.wait (!%p389_p1), %s265_s27, 256  }
  0x77   : > { %568 = vsyncadd (!%p389_p1), %s265_s27, 4294967040  ;;  %s21_s14 = sadd.s32 1, %s591_s14   ;;  %s854_s9 = smov %s575_s10 }
  0x78   : > { %p18_p2 = scmp.ge.s32.totalorder %s21_s14, 4   ;;  %s855_s10 = smov %s579_s11 }
  0x79   : > { %s856_s11 = smov %s669_s23  ;;  %s857_s12 = smov %s587_s13 }
  0x7a   : > { %s858_s13 = smov %s860_s17  ;;  %20 = sbr.rel (!%p18_p2) target bundleno = 8 (0x8), region = 91 }
  0x81   :  { %270 = vsyncpa [#allocation3], 1 }
  0x82   :  { %272 = vsyncpa [#allocation3 + $0x1], 1 }
  0x83   :  { %273 = vsyncpa [#allocation6], 1 }
  0x84   :  { %275 = vsyncpa [#allocation6 + $0x1], 1 }
  0x85   :  { %276 = vsyncpa [#allocation4], 1 }
  0x86   :  { %278 = vsyncpa [#allocation4 + $0x1], 1 }

</bundles_post_ra>
